<compile_context>
chip_gen: v6e
topology: v6e:2x2x1
jax: 0.10.0
libtpu: 0.0.40
codegen_flags: <defaults>
</compile_context>

<pallas_src>
import functools
import math

import jax
import jax.numpy as jnp
from jax.experimental import pallas as pl
from jax.experimental.pallas import tpu as pltpu


_LANE_COLS = 512       # lane-dense last dim (multiple of 128)
_MAX_TILE_ROWS = 1024  # (1024, 512) f32 block = 2 MiB; x2 (in+out) x2 (dbl-buf) = 8 MiB

# Whether the hardware-PRNG kernels are usable.  Flipped to False once if their
# lowering fails (e.g. non-TPU backend); the hash-based kernels then take over.
_HW_PRNG_OK = jax.default_backend() == "tpu"


def _round_up(a, b):
    return ((a + b - 1) // b) * b


# ----------------------------------------------------------------------------
# Random-bit sources
# ----------------------------------------------------------------------------

def _hw_random_bits(seed_ref, shape):
    """Per-tile independent uint32 bits from the TPU hardware PRNG."""
    pltpu.prng_seed(seed_ref[0], pl.program_id(0))
    bits = pltpu.prng_random_bits(shape)
    if bits.dtype != jnp.uint32:           # trace-time check; some versions give int32
        bits = pltpu.bitcast(bits, jnp.uint32)
    return bits


def _hash_u32(v):
    """splitmix32-style avalanche hash on uint32 arrays (wraps mod 2**32)."""
    v = (v ^ (v >> 16)) * jnp.uint32(0x7FEB352D)
    v = (v ^ (v >> 15)) * jnp.uint32(0x846CA68B)
    v = v ^ (v >> 16)
    return v


def _hash_random_bits(seed_ref, shape):
    """Stateless counter-based bits: pure function of (seed, global element index).

    Portable fallback (plain jnp/VPU ops) for backends where the stateful
    pltpu.prng_* primitives do not lower.
    """
    tile_rows, cols = shape
    i = pl.program_id(0)
    row = jax.lax.broadcasted_iota(jnp.int32, shape, 0) + i * tile_rows
    col = jax.lax.broadcasted_iota(jnp.int32, shape, 1)
    gidx = row.astype(jnp.uint32) * jnp.uint32(cols) + col.astype(jnp.uint32)
    key = seed_ref[0].astype(jnp.uint32) * jnp.uint32(0x9E3779B9)
    return _hash_u32(gidx + key)


# ----------------------------------------------------------------------------
# Kernel bodies (shared math, two bit sources each)
# ----------------------------------------------------------------------------

def _bernoulli_body(bits, x_ref, o_ref, threshold, scale):
    keep = bits >= jnp.uint32(threshold)            # P(keep) = 1 - p
    x = x_ref[...]
    scaled = x * jnp.asarray(scale, dtype=x.dtype)  # compute stays in x's dtype
    o_ref[...] = jnp.where(keep, scaled, jnp.zeros_like(x))


def _gaussian_body(bits, x_ref, o_ref, mu, sigma):
    # One 32-bit draw -> two 16-bit uniforms for Box-Muller (log/cos/sqrt -> EUP).
    hi = (bits >> 16).astype(jnp.int32).astype(jnp.float32)            # [0, 65535]
    lo = (bits & jnp.uint32(0xFFFF)).astype(jnp.int32).astype(jnp.float32)
    u1 = (hi + 1.0) * jnp.float32(1.0 / 65536.0)                       # (0, 1] -> log finite
    u2 = lo * jnp.float32(1.0 / 65536.0)                               # [0, 1)
    z = jnp.sqrt(-2.0 * jnp.log(u1)) * jnp.cos(jnp.float32(2.0 * math.pi) * u2)
    soft_mask = jnp.clip(jnp.float32(mu) + jnp.float32(sigma) * z, 0.0, 1.0)
    x = x_ref[...].astype(jnp.float32)
    o_ref[...] = (jnp.float32(1.0 / mu) * soft_mask * x).astype(o_ref.dtype)


def _bernoulli_hw_kernel(seed_ref, x_ref, o_ref, *, threshold, scale):
    _bernoulli_body(_hw_random_bits(seed_ref, x_ref.shape), x_ref, o_ref, threshold, scale)


def _bernoulli_hash_kernel(seed_ref, x_ref, o_ref, *, threshold, scale):
    _bernoulli_body(_hash_random_bits(seed_ref, x_ref.shape), x_ref, o_ref, threshold, scale)


def _gaussian_hw_kernel(seed_ref, x_ref, o_ref, *, mu, sigma):
    _gaussian_body(_hw_random_bits(seed_ref, x_ref.shape), x_ref, o_ref, mu, sigma)


def _gaussian_hash_kernel(seed_ref, x_ref, o_ref, *, mu, sigma):
    _gaussian_body(_hash_random_bits(seed_ref, x_ref.shape), x_ref, o_ref, mu, sigma)


# ----------------------------------------------------------------------------
# Wrapper
# ----------------------------------------------------------------------------

def _run_elementwise(kernel_hw, kernel_hash, x, seed, *, transcendentals_per_elem=0):
    """Run an elementwise dropout kernel over a lane-dense, row-tiled 2-D view."""
    global _HW_PRNG_OK

    orig_shape = x.shape
    orig_dtype = x.dtype
    total = int(x.size)
    cols = _LANE_COLS

    rows_needed = max(pl.cdiv(total, cols), 1)
    rows8 = _round_up(rows_needed, 8)               # sublane multiple
    tile_rows = min(_MAX_TILE_ROWS, rows8)
    rows = _round_up(rows8, tile_rows)              # clean full tiles only
    padded = rows * cols

    flat = x.reshape(-1)
    if padded != total:
        flat = jnp.pad(flat, (0, padded - total))
    x2d = flat.reshape(rows, cols)
    seed_arr = jnp.asarray([seed], dtype=jnp.int32)

    itemsize = jnp.dtype(orig_dtype).itemsize

    def _call(kernel_fn):
        return pl.pallas_call(
            kernel_fn,
            out_shape=jax.ShapeDtypeStruct((rows, cols), orig_dtype),
            grid_spec=pltpu.PrefetchScalarGridSpec(
                num_scalar_prefetch=1,
                grid=(rows // tile_rows,),
                in_specs=[pl.BlockSpec((tile_rows, cols), lambda i, seed_ref: (i, 0))],
                out_specs=pl.BlockSpec((tile_rows, cols), lambda i, seed_ref: (i, 0)),
            ),
            compiler_params=pltpu.CompilerParams(
                dimension_semantics=("parallel",),   # megacore sharding on v7x
            ),
            cost_estimate=pl.CostEstimate(
                flops=12 * padded,
                transcendentals=transcendentals_per_elem * padded,
                bytes_accessed=2 * padded * itemsize,
            ),
        )(seed_arr, x2d)

    if _HW_PRNG_OK:
        try:
            out2d = _call(kernel_hw)
        except Exception:
            # Hardware PRNG lowering unavailable on this backend; fall back once.
            _HW_PRNG_OK = False
            out2d = _call(kernel_hash)
    else:
        out2d = _call(kernel_hash)

    return out2d.reshape(-1)[:total].reshape(orig_shape)


class PallasDropout:
    """JAX/Pallas port of the PyTorch `Dropout` module's forward pass."""

    DISTRIBUTIONS = ["none", "bernoulli", "gaussian", "infodrop"]

    def __init__(self, p=0.1, mu=0.1, sigma=0.03, dist="bernoulli",
                 kernel=3, temperature=0.2):
        assert dist in PallasDropout.DISTRIBUTIONS
        self.dist = dist
        self.p = float(p)
        assert 0.0 <= self.p <= 1.0
        self.mu = float(mu)
        self.sigma = float(sigma)
        assert self.sigma > 0.0
        self.kernel = kernel
        assert self.kernel >= 3
        self.temperature = temperature
        assert self.temperature > 0.0
        self.training = True

    def __call__(self, x, x_original=None, seed=0):
        if not self.training:
            return x

        if self.dist == "bernoulli":
            if self.p == 0.0:
                return x
            if self.p == 1.0:
                return jnp.zeros_like(x)
            threshold = min(max(int(round(self.p * 2.0 ** 32)), 1), 2 ** 32 - 1)
            scale = 1.0 / (1.0 - self.p)
            k_hw = functools.partial(_bernoulli_hw_kernel, threshold=threshold, scale=scale)
            k_hash = functools.partial(_bernoulli_hash_kernel, threshold=threshold, scale=scale)
            return _run_elementwise(k_hw, k_hash, x, seed, transcendentals_per_elem=0)
        elif self.dist == "gaussian":
            k_hw = functools.partial(_gaussian_hw_kernel, mu=self.mu, sigma=self.sigma)
            k_hash = functools.partial(_gaussian_hash_kernel, mu=self.mu, sigma=self.sigma)
            return _run_elementwise(k_hw, k_hash, x, seed, transcendentals_per_elem=3)
        elif self.dist == "infodrop":
            # TODO(synk): `info_dropout` is defined outside the provided module; not implemented.
            raise NotImplementedError("infodrop requires external info_dropout()")
        else:  # 'none'
            return x


if __name__ == "__main__":
    key = jax.random.PRNGKey(0)
    x = jax.random.normal(key, (2, 4, 16, 16), dtype=jnp.float32)  # NCHW

    # Bernoulli dropout (default config of the module).
    drop_b = PallasDropout(p=0.1, dist="bernoulli")
    out_b = jax.block_until_ready(drop_b(x, seed=0))
    assert out_b.shape == x.shape and out_b.dtype == x.dtype
    # Surviving elements are exactly x / (1 - p); dropped ones are exactly 0.
    nonzero = out_b != 0.0
    assert bool(jnp.all(jnp.where(nonzero,
                                  jnp.abs(out_b - x / (1.0 - 0.1)) < 1e-5,
                                  out_b == 0.0)))
    # Drop rate is roughly p (very loose bound; 2048 samples).
    drop_frac = float(jnp.mean((out_b == 0.0).astype(jnp.float32)))
    assert 0.02 <= drop_frac <= 0.25, drop_frac

    # Gaussian (multiplicative) dropout.
    drop_g = PallasDropout(mu=0.1, sigma=0.03, dist="gaussian")
    out_g = jax.block_until_ready(drop_g(x, seed=1))
    assert out_g.shape == x.shape and out_g.dtype == x.dtype
    assert bool(jnp.all(jnp.isfinite(out_g)))

    # 'none' distribution and eval mode are identity.
    drop_n = PallasDropout(dist="none")
    out_n = jax.block_until_ready(drop_n(x))
    assert bool(jnp.all(out_n == x))
    drop_b.training = False
    out_eval = jax.block_until_ready(drop_b(x))
    assert bool(jnp.all(out_eval == x))

    print("KERNEL_OK")
</pallas_src>

<mosaic_0001>
module attributes {stable_mosaic.version = 11 : i64} {
  func.func @_bernoulli_hash_kernel(%arg0: i32, %arg1: memref<1xi32, #tpu.memory_space<smem>>, %arg2: memref<8x512xf32, #tpu.memory_space<vmem>>, %arg3: memref<8x512xf32, #tpu.memory_space<vmem>>) attributes {dimension_semantics = [#tpu.dimension_semantics<parallel>], iteration_bounds = array<i64: 1>, scalar_prefetch = 1 : i64, scratch_operands = 0 : i64, tpu.core_type = #tpu.core_type<tc>, window_params = [{transform_indices = @transform_0, window_bounds = array<i64: 8, 512>}, {transform_indices = @transform_1, window_bounds = array<i64: 8, 512>}]} {
    %0 = tpu.iota {dimensions = array<i32: 0>} : vector<8x512xi32>
    %c8_i32 = arith.constant 8 : i32
    %1 = arith.muli %arg0, %c8_i32 : i32
    %2 = vector.broadcast %1 : i32 to vector<8x512xi32>
    %3 = arith.addi %0, %2 : vector<8x512xi32>
    %4 = tpu.iota {dimensions = array<i32: 1>} : vector<8x512xi32>
    %c512_i32 = arith.constant 512 : i32
    %5 = vector.broadcast %c512_i32 : i32 to vector<8x512xi32>
    %6 = arith.muli %3, %5 : vector<8x512xi32>
    %7 = arith.addi %6, %4 : vector<8x512xi32>
    %c0 = arith.constant 0 : index
    %8 = memref.load %arg1[%c0] : memref<1xi32, #tpu.memory_space<smem>>
    %c-1640531527_i32 = arith.constant -1640531527 : i32
    %9 = arith.muli %8, %c-1640531527_i32 : i32
    %10 = vector.broadcast %9 : i32 to vector<8x512xi32>
    %11 = arith.addi %7, %10 : vector<8x512xi32>
    %c16_i32 = arith.constant 16 : i32
    %12 = vector.broadcast %c16_i32 : i32 to vector<8x512xi32>
    %13 = arith.shrui %11, %12 : vector<8x512xi32>
    %14 = arith.xori %11, %13 : vector<8x512xi32>
    %c2146121005_i32 = arith.constant 2146121005 : i32
    %15 = vector.broadcast %c2146121005_i32 : i32 to vector<8x512xi32>
    %16 = arith.muli %14, %15 : vector<8x512xi32>
    %c15_i32 = arith.constant 15 : i32
    %17 = vector.broadcast %c15_i32 : i32 to vector<8x512xi32>
    %18 = arith.shrui %16, %17 : vector<8x512xi32>
    %19 = arith.xori %16, %18 : vector<8x512xi32>
    %c-2073254261_i32 = arith.constant -2073254261 : i32
    %20 = vector.broadcast %c-2073254261_i32 : i32 to vector<8x512xi32>
    %21 = arith.muli %19, %20 : vector<8x512xi32>
    %c16_i32_0 = arith.constant 16 : i32
    %22 = vector.broadcast %c16_i32_0 : i32 to vector<8x512xi32>
    %23 = arith.shrui %21, %22 : vector<8x512xi32>
    %24 = arith.xori %21, %23 : vector<8x512xi32>
    %c429496730_i32 = arith.constant 429496730 : i32
    %25 = vector.broadcast %c429496730_i32 : i32 to vector<8x512xi32>
    %26 = arith.cmpi uge, %24, %25 : vector<8x512xi32>
    %c0_1 = arith.constant 0 : index
    %c0_2 = arith.constant 0 : index
    %27 = vector.load %arg2[%c0_1, %c0_2] : memref<8x512xf32, #tpu.memory_space<vmem>>, vector<8x512xf32>
    %cst = arith.constant 1.11111116 : f32
    %28 = vector.broadcast %cst : f32 to vector<8x512xf32>
    %29 = arith.mulf %27, %28 : vector<8x512xf32>
    %cst_3 = arith.constant 0.000000e+00 : f32
    %30 = vector.broadcast %cst_3 : f32 to vector<8x512xf32>
    %31 = arith.select %26, %29, %30 : vector<8x512xi1>, vector<8x512xf32>
    %c0_4 = arith.constant 0 : index
    %c0_5 = arith.constant 0 : index
    %32 = vector.load %arg3[%c0_4, %c0_5] : memref<8x512xf32, #tpu.memory_space<vmem>>, vector<8x512xf32>
    tpu.vector_store %arg3[%c0_4, %c0_5], %31 {strides = array<i32>} : memref<8x512xf32, #tpu.memory_space<vmem>>, vector<8x512xf32>,
    return
  }
  func.func @transform_0(%arg0: i32, %arg1: memref<1xi32, #tpu.memory_space<smem>>) -> (i32, i32) {
    %c0_i32 = arith.constant 0 : i32
    %c0_i32_0 = arith.constant 0 : i32
    return %arg0, %c0_i32 : i32, i32
  }
  func.func @transform_1(%arg0: i32, %arg1: memref<1xi32, #tpu.memory_space<smem>>) -> (i32, i32) {
    %c0_i32 = arith.constant 0 : i32
    %c0_i32_0 = arith.constant 0 : i32
    return %arg0, %c0_i32 : i32, i32
  }
}

</mosaic_0001>

<bundles_post_ra>
// kernel: tpu_custom_call.1
= control target key start
LH: loop header
LB: loop body
LE: loop exit
PB: predicated region body
PF: predicated region fallthrough
CT: control target
= control target key end

     0   :  { %8 = vsyncpa [#allocation5], 0  ;;  %s184_s0 = inlined_call_operand.<no memory space> [shape: s32[1], index: 0, kind: input, shape index: {}]   ;;  %s185_s1 = inlined_call_operand.hbm [shape: f32[8,512], index: 1, kind: input, shape index: {}]   ;;  %s186_s2 = inlined_call_operand.hbm [shape: f32[8,512], index: 2, kind: output, shape index: {}]  }
   0x1   :  { %9 = vsyncpa [#allocation6], 0  ;;  %s158_s9 = smov [#allocation4]  }
   0x2   :  { %s16_s10 = sshll.u32 %s158_s9, 4  ;;  %s17_s10 = int_to_ptr.vmem [resolvable:$true] %s16_s10 }
   0x3   :  { %s122_s11 = scalar_lea.vmem %s17_s10, 512  ;;  %p127_p1 = scmp.lt.s32.totalorder %s17_s10, %s17_s10 }
   0x4   :  { %p123_p0 = scmp.ne.s32.totalorder %s17_s10, %s122_s11  ;;  %p128_p2 = scmp.lt.s32.totalorder %s122_s11, %s122_s11 }
   0x6   :  { %p129_p3 = por %p128_p2, %p127_p1 }
   0x8   :  { %p130_p4 = pnand %p129_p3, %p123_p0 }
   0xa   :  { %133 = shalt.err (!%p130_p4)
}
   0xb   :  { %19 = dma.hbm_to_vmem [thread:$0]  %s185_s1, 512, %s17_s10, [#allocation5]  }
   0xc   :  { %154 = dma.done.wait [#allocation5], 512  }
   0xd   :  { %155 = vsyncadd [#allocation5], 4294966784  ;;  %v23_v0 = vlaneseq  ;;  %s39_s16 = smul.u32 2654435769, %s184_s0  ;;  %v81_v37 = vld [vmem:[#allocation4] sm:$0xff]  ;;  %v82_v39 = vld [vmem:[#allocation4 + $0x8] sm:$0xff] }
   0xe   :  { %v83_v41 = vld [vmem:[#allocation4 + $0x10] sm:$0xff]  ;;  %v84_v43 = vld [vmem:[#allocation4 + $0x18] sm:$0xff]  ;;  %v85_v46 = vmul.f32 1.1111112, %v81_v37  ;;  %v86_v47 = vmul.f32 1.1111112, %v82_v39 }
   0xf   :  { %v24_v1 = vshrl.u32 %v23_v0, 7  ;;  %v29_v2 = vand.u32 127, %v23_v0  ;;  %v40_v7 = vstv %s39_s16  ;;  %v87_v52 = vmul.f32 1.1111112, %v83_v41  ;;  %s159_s0 = smov [#allocation7]  }
  0x10   :  { %v88_v53 = vmul.f32 1.1111112, %v84_v43  ;;  %s103_s1 = sshll.u32 %s159_s0, 4  ;;  %s104_s1 = int_to_ptr.vmem [resolvable:$true] %s103_s1 }
  0x11   :  { %v33_v3 = vmul.u32 512, %v24_v1  ;;  %v30_v4 = vadd.s32 128, %v29_v2  ;;  %v31_v5 = vadd.s32 256, %v29_v2  ;;  %v32_v6 = vadd.s32 384, %v29_v2  ;;  %s134_s17 = scalar_lea.vmem %s104_s1, 512  ;;  %p139_p6 = scmp.lt.s32.totalorder %s104_s1, %s104_s1 }
  0x12   :  { %p135_p5 = scmp.ne.s32.totalorder %s104_s1, %s134_s17  ;;  %p140_p7 = scmp.lt.s32.totalorder %s134_s17, %s134_s17 }
  0x13   :  { %v34_v8 = vadd.s32 %v33_v3, %v29_v2  ;;  %v35_v9 = vadd.s32 %v33_v3, %v30_v4  ;;  %v36_v10 = vadd.s32 %v33_v3, %v31_v5  ;;  %v37_v11 = vadd.s32 %v33_v3, %v32_v6 }
  0x14   :  { %p141_p8 = por %p140_p7, %p139_p6 }
  0x15   :  { %v41_v12 = vadd.s32 %v40_v7, %v34_v8  ;;  %v42_v13 = vadd.s32 %v40_v7, %v35_v9  ;;  %v43_v14 = vadd.s32 %v40_v7, %v36_v10  ;;  %v44_v15 = vadd.s32 %v40_v7, %v37_v11 }
  0x16   :  { %p142_p9 = pnand %p141_p8, %p135_p5 }
  0x17   :  { %v45_v16 = vshrl.u32 %v41_v12, 16  ;;  %v46_v17 = vshrl.u32 %v42_v13, 16  ;;  %v47_v18 = vshrl.u32 %v43_v14, 16  ;;  %v48_v19 = vshrl.u32 %v44_v15, 16 }
  0x19   :  { %v49_v20 = vxor.u32 %v45_v16, %v41_v12  ;;  %v50_v21 = vxor.u32 %v46_v17, %v42_v13  ;;  %v51_v22 = vxor.u32 %v47_v18, %v43_v14  ;;  %v52_v23 = vxor.u32 %v48_v19, %v44_v15 }
  0x1b   :  { %v53_v24 = vmul.u32 2146121005, %v49_v20  ;;  %v54_v25 = vmul.u32 2146121005, %v50_v21 }
  0x1c   :  { %v55_v26 = vmul.u32 2146121005, %v51_v22  ;;  %v56_v27 = vmul.u32 2146121005, %v52_v23 }
  0x1d   :  { %v57_v28 = vshrl.u32 %v53_v24, 15  ;;  %v58_v29 = vshrl.u32 %v54_v25, 15 }
  0x1e   :  { %v59_v30 = vshrl.u32 %v55_v26, 15  ;;  %v60_v31 = vshrl.u32 %v56_v27, 15 }
  0x1f   :  { %v61_v32 = vxor.u32 %v57_v28, %v53_v24  ;;  %v62_v33 = vxor.u32 %v58_v29, %v54_v25 }
  0x20   :  { %v63_v34 = vxor.u32 %v59_v30, %v55_v26  ;;  %v64_v35 = vxor.u32 %v60_v31, %v56_v27 }
  0x21   :  { %v65_v36 = vmul.u32 2221713035, %v61_v32  ;;  %v66_v38 = vmul.u32 2221713035, %v62_v33 }
  0x22   :  { %v67_v40 = vmul.u32 2221713035, %v63_v34  ;;  %v68_v42 = vmul.u32 2221713035, %v64_v35 }
  0x23   :  { %v69_v44 = vshrl.u32 %v65_v36, 16  ;;  %v70_v45 = vshrl.u32 %v66_v38, 16 }
  0x24   :  { %v71_v48 = vshrl.u32 %v67_v40, 16  ;;  %v72_v49 = vshrl.u32 %v68_v42, 16 }
  0x25   :  { %v73_v50 = vxor.u32 %v69_v44, %v65_v36  ;;  %v74_v51 = vxor.u32 %v70_v45, %v66_v38 }
  0x26   :  { %v75_v54 = vxor.u32 %v71_v48, %v67_v40  ;;  %v76_v55 = vxor.u32 %v72_v49, %v68_v42 }
  0x27   :  { %vm77_vm0 = vcmp.ge.u32.totalorder %v73_v50, 429496730  ;;  %vm78_vm1 = vcmp.ge.u32.totalorder %v74_v51, 429496730 }
  0x28   :  { %v89_v56 = vsel %vm77_vm0, %v85_v46, 0.0  ;;  %v90_v57 = vsel %vm78_vm1, %v86_v47, 0.0  ;;  %vm79_vm2 = vcmp.ge.u32.totalorder %v75_v54, 429496730  ;;  %vm80_vm3 = vcmp.ge.u32.totalorder %v76_v55, 429496730 }
  0x29   :  { %93 = vst [vmem:[#allocation7] sm:$0xff] %v89_v56  ;;  %94 = vst [vmem:[#allocation7 + $0x8] sm:$0xff] %v90_v57  ;;  %v91_v58 = vsel %vm79_vm2, %v87_v52, 0.0  ;;  %v92_v59 = vsel %vm80_vm3, %v88_v53, 0.0 }
  0x2a   :  { %95 = vst [vmem:[#allocation7 + $0x10] sm:$0xff] %v91_v58  ;;  %96 = vst [vmem:[#allocation7 + $0x18] sm:$0xff] %v92_v59 }
  0x2b   :  { %145 = shalt.err (!%p142_p9)
}
  0x2c   :  { %106 = dma.vmem_to_hbm [thread:$0]  %s104_s1, 512, %s186_s2, [#allocation6]  }
  0x2d   :  { %156 = dma.done.wait [#allocation6], 512  }
  0x2e   :  { %157 = vsyncadd [#allocation6], 4294966784 }
  0x2f   :  { %110 = vsyncpa [#allocation5], 1 }
  0x30   :  { %111 = vsyncpa [#allocation6], 1 }

</bundles_post_ra>
